<compile_context>
chip_gen: v7x
topology: tpu7x:2x2x1
jax: 0.10.0
libtpu: 0.0.40
codegen_flags: <defaults>
</compile_context>

<pallas_src>
import functools

import jax
import jax.numpy as jnp
from jax.experimental import pallas as pl
from jax.experimental.pallas import tpu as pltpu

# torchvision rgb_to_grayscale coefficients
_GRAY_R, _GRAY_G, _GRAY_B = 0.2989, 0.587, 0.114


def _round_up(n: int, m: int) -> int:
    return ((n + m - 1) // m) * m


def _pick_tile_h(h_a: int, max_tile: int = 512) -> int:
    """Largest 128-multiple tile that divides h_a and is <= max_tile."""
    blocks = h_a // 128
    best = 1
    for d in range(1, blocks + 1):
        if blocks % d == 0 and d * 128 <= max_tile:
            best = d
    return best * 128


def _bilinear_matrix(out_size: int, in_size: int) -> jnp.ndarray:
    """(out_size, in_size) row-stochastic bilinear interpolation matrix."""
    i = jnp.arange(out_size, dtype=jnp.float32)
    s = (i + 0.5) * (in_size / out_size) - 0.5
    left = jnp.floor(s)
    frac = s - left
    l0 = jnp.clip(left.astype(jnp.int32), 0, in_size - 1)
    l1 = jnp.clip(left.astype(jnp.int32) + 1, 0, in_size - 1)
    rows = jnp.arange(out_size)
    w = jnp.zeros((out_size, in_size), jnp.float32)
    w = w.at[rows, l0].add(1.0 - frac)
    w = w.at[rows, l1].add(frac)
    return w


def _cutouts_kernel(img_ref, wy_ref, wxt_ref, rgb_ref):
    # img_ref : (1, tile_h, w_a)   one channel / one height tile of the image
    # wy_ref  : (cut_a, tile_h)    vertical resize weights for this tile
    # wxt_ref : (w_a, cut_a)       horizontal resize weights (transposed)
    # rgb_ref : (1, cut_a, cut_a)  per-channel cutout accumulator (f32),
    #                              resident across the tile (reduction) axis
    t = pl.program_id(1)

    # Horizontal resize first: M = tile_h keeps the MXU fed; f32 accumulate.
    tmp = jnp.dot(img_ref[0], wxt_ref[...],
                  preferred_element_type=jnp.float32)        # (tile_h, cut_a)
    # Keep the (small) vertical matmul on the bf16 MXU path as well.
    tmp = tmp.astype(wxt_ref.dtype)
    part = jnp.dot(wy_ref[...], tmp,
                   preferred_element_type=jnp.float32)       # (cut_a, cut_a)

    @pl.when(t == 0)
    def _():
        rgb_ref[0] = part

    @pl.when(t > 0)
    def _():
        rgb_ref[0] = rgb_ref[0] + part


@functools.partial(jax.jit, static_argnames=("cut_size", "compute_dtype"))
def make_cutouts_dango(x: jnp.ndarray, cut_size: int,
                       compute_dtype=jnp.bfloat16) -> jnp.ndarray:
    """x: [1, 3, sideY, sideX] float32 -> [4, 3, cut_size, cut_size] float32."""
    _, _, side_y, side_x = x.shape
    max_size = min(side_x, side_y)

    # F.pad(input, (py, py, px, px)): width (last dim) padded by py, height
    # (second-last) by px — faithfully reproducing the PyTorch module's
    # (swapped-looking) F.pad argument order.
    py = (side_y - max_size) // 2
    px = (side_x - max_size) // 2
    hp = side_y + 2 * px          # padded height seen by the resize
    wp = side_x + 2 * py          # padded width seen by the resize

    # Alignment sizes (128-multiples) -> lane-dense blocks / full MXU tiles.
    h_a = _round_up(side_y, 128)
    w_a = _round_up(side_x, 128)
    cut_a = _round_up(cut_size, 128)
    tile_h = _pick_tile_h(h_a)
    n_tiles = h_a // tile_h

    # Single fused alignment-pad + cast of the *un-center-padded* image.  The
    # center pad is baked into the interpolation matrices below: the padded
    # pixels are exactly zero, so dropping their weight columns is exact, and
    # the alignment-pad rows/cols are zero so zero-padded weights are exact too.
    img_a = jnp.pad(x[0], ((0, 0), (0, h_a - side_y), (0, w_a - side_x))
                    ).astype(compute_dtype)

    wy = jnp.pad(_bilinear_matrix(cut_size, hp)[:, px:px + side_y],
                 ((0, cut_a - cut_size), (0, h_a - side_y))).astype(compute_dtype)
    wxt = jnp.pad(_bilinear_matrix(cut_size, wp)[:, py:py + side_x].T,
                  ((0, w_a - side_x), (0, cut_a - cut_size))).astype(compute_dtype)

    # Explicit VMEM budget from the actual (double-buffered) block footprint.
    csz = jnp.dtype(compute_dtype).itemsize
    block_bytes = (2 * tile_h * w_a * csz        # image tile, double-buffered
                   + 2 * cut_a * tile_h * csz    # wy tile
                   + 2 * w_a * cut_a * csz       # wxt (constant block)
                   + 2 * cut_a * cut_a * 4)      # rgb output block
    vmem_limit = int(min(64 << 20,
                         max(16 << 20, block_bytes * 3 // 2 + (4 << 20))))

    rgb = pl.pallas_call(
        _cutouts_kernel,
        out_shape=jax.ShapeDtypeStruct((3, cut_a, cut_a), jnp.float32),
        grid=(3, n_tiles),
        in_specs=[
            # per-channel / per-height-tile image slab: pipelined DMA
            pl.BlockSpec((1, tile_h, w_a), lambda c, t: (c, t, 0)),
            # vertical weights for this height tile
            pl.BlockSpec((cut_a, tile_h), lambda c, t: (0, t)),
            # horizontal weights: constant block, fetched once
            pl.BlockSpec((w_a, cut_a), lambda c, t: (0, 0)),
        ],
        # per-channel cutout: resident across the tile (reduction) axis,
        # written back when the channel changes.
        out_specs=pl.BlockSpec((1, cut_a, cut_a), lambda c, t: (c, 0, 0)),
        compiler_params=pltpu.CompilerParams(
            dimension_semantics=("parallel", "arbitrary"),
            vmem_limit_bytes=vmem_limit),
    )(img_a, wy, wxt)

    # Tiny epilogue in plain JAX: slice off alignment padding, gray (weighted
    # sum of the three planes), hflip (free lane reverse; gray(hflip(x)) ==
    # hflip(gray(x))), replicate gray, stack.
    a = rgb[:, :cut_size, :cut_size]                   # (3, cut, cut)
    g = _GRAY_R * a[0] + _GRAY_G * a[1] + _GRAY_B * a[2]
    a_flip = a[:, :, ::-1]
    g_flip = g[:, ::-1]
    g3 = jnp.broadcast_to(g[None], (3, cut_size, cut_size))
    g3_flip = jnp.broadcast_to(g_flip[None], (3, cut_size, cut_size))
    return jnp.stack([a, g3, a_flip, g3_flip], axis=0)  # (4, 3, cut, cut)


def _reference(x, cut_size, compute_dtype=jnp.bfloat16):
    """Plain-JAX reference of the same math/dtype pipeline (sanity check)."""
    _, _, side_y, side_x = x.shape
    max_size = min(side_x, side_y)
    py = (side_y - max_size) // 2
    px = (side_x - max_size) // 2
    img = jnp.pad(x[0].astype(jnp.float32), ((0, 0), (px, px), (py, py)))
    hp, wp = img.shape[1], img.shape[2]
    wy = _bilinear_matrix(cut_size, hp).astype(compute_dtype).astype(jnp.float32)
    wx = _bilinear_matrix(cut_size, wp).astype(compute_dtype).astype(jnp.float32)
    imgc = img.astype(compute_dtype).astype(jnp.float32)
    tmp = jnp.einsum("chw,wx->chx", imgc, wx.T)            # horizontal, f32 acc
    tmp = tmp.astype(compute_dtype).astype(jnp.float32)    # mirrors kernel cast
    cut = jnp.einsum("yh,chx->cyx", wy, tmp)               # vertical
    cut_f = cut[:, :, ::-1]

    def gray(c):
        return jnp.broadcast_to(
            (_GRAY_R * c[0] + _GRAY_G * c[1] + _GRAY_B * c[2])[None], c.shape)

    return jnp.stack([cut, gray(cut), cut_f, gray(cut_f)], axis=0)


if __name__ == "__main__":
    key = jax.random.PRNGKey(0)
    k1, k2, k3 = jax.random.split(key, 3)

    # Small smoke test (non-square: exercises the baked-in center pad).
    x1 = jax.random.normal(k1, (1, 3, 20, 24), dtype=jnp.float32)
    out1 = jax.block_until_ready(make_cutouts_dango(x1, 16))
    assert out1.shape == (4, 3, 16, 16), out1.shape
    ref1 = _reference(x1, 16)
    assert jnp.allclose(out1, ref1, rtol=1e-2, atol=1e-2), \
        float(jnp.max(jnp.abs(out1 - ref1)))

    # Non-128-aligned cut size from a non-square image (alignment/slice paths).
    x2 = jax.random.normal(k2, (1, 3, 256, 320), dtype=jnp.float32)
    out2 = jax.block_until_ready(make_cutouts_dango(x2, 224))
    assert out2.shape == (4, 3, 224, 224), out2.shape
    ref2 = _reference(x2, 224)
    assert jnp.allclose(out2, ref2, rtol=1e-2, atol=1e-2), \
        float(jnp.max(jnp.abs(out2 - ref2)))

    # Tall image: exercises the multi-tile (n_tiles > 1) accumulation path.
    x3 = jax.random.normal(k3, (1, 3, 640, 512), dtype=jnp.float32)
    out3 = jax.block_until_ready(make_cutouts_dango(x3, 128))
    assert out3.shape == (4, 3, 128, 128), out3.shape
    ref3 = _reference(x3, 128)
    assert jnp.allclose(out3, ref3, rtol=1e-2, atol=1e-2), \
        float(jnp.max(jnp.abs(out3 - ref3)))

    print("KERNEL_OK")
</pallas_src>

<mosaic_0001>
module attributes {stable_mosaic.version = 11 : i64} {
  func.func private @main(%arg0: i32) attributes {dimension_semantics = [#tpu.dimension_semantics<core_parallel>], iteration_bounds = array<i64: 2>, tpu.core_type = #tpu.core_type<sc_scalar_subcore>, window_params = []} {
    return
  }
}

module attributes {stable_mosaic.version = 11 : i64} {
  func.func private @main(%arg0: i32) attributes {dimension_semantics = [#tpu.dimension_semantics<core_parallel>], iteration_bounds = array<i64: 2>, tpu.core_type = #tpu.core_type<sc_scalar_subcore>, window_params = []} {
    return
  }
}

module attributes {stable_mosaic.version = 11 : i64} {
  func.func @_cutouts_kernel(%arg0: i32, %arg1: i32, %arg2: memref<1x128x128xbf16, #tpu.memory_space<vmem>>, %arg3: memref<128x128xbf16, #tpu.memory_space<vmem>>, %arg4: memref<128x128xbf16, #tpu.memory_space<vmem>>, %arg5: memref<1x128x128xf32, #tpu.memory_space<vmem>>) attributes {dimension_semantics = [#tpu.dimension_semantics<parallel>, #tpu.dimension_semantics<arbitrary>], iteration_bounds = array<i64: 3, 1>, scalar_prefetch = 0 : i64, scratch_operands = 0 : i64, tpu.core_type = #tpu.core_type<tc>, window_params = [{transform_indices = @transform_0, window_bounds = array<i64: 1, 128, 128>}, {transform_indices = @transform_1, window_bounds = array<i64: 128, 128>}, {pipeline_mode = #tpu.pipeline_mode<synchronous>, transform_indices = @transform_2, window_bounds = array<i64: 128, 128>}, {transform_indices = @transform_3, window_bounds = array<i64: 1, 128, 128>}]} {
    %c0 = arith.constant 0 : index
    %c0_0 = arith.constant 0 : index
    %c0_1 = arith.constant 0 : index
    %0 = vector.load %arg2[%c0, %c0_0, %c0_1] : memref<1x128x128xbf16, #tpu.memory_space<vmem>>, vector<1x128x128xbf16>
    %1 = vector.shape_cast %0 : vector<1x128x128xbf16> to vector<128x128xbf16>
    %c0_2 = arith.constant 0 : index
    %c0_3 = arith.constant 0 : index
    %2 = vector.load %arg4[%c0_2, %c0_3] : memref<128x128xbf16, #tpu.memory_space<vmem>>, vector<128x128xbf16>
    %cst = arith.constant dense<0.000000e+00> : vector<128x128xf32>
    %3 = tpu.matmul %1, %2, %cst {dimension_numbers = #tpu.dot_dimension_numbers<[1], [0], [0], [1], [0, 0, 1, 1], [], []>} : vector<128x128xbf16>, vector<128x128xbf16>, vector<128x128xf32> -> vector<128x128xf32>
    %4 = arith.truncf %3 : vector<128x128xf32> to vector<128x128xbf16>
    %c0_4 = arith.constant 0 : index
    %c0_5 = arith.constant 0 : index
    %5 = vector.load %arg3[%c0_4, %c0_5] : memref<128x128xbf16, #tpu.memory_space<vmem>>, vector<128x128xbf16>
    %cst_6 = arith.constant dense<0.000000e+00> : vector<128x128xf32>
    %6 = tpu.matmul %5, %4, %cst_6 {dimension_numbers = #tpu.dot_dimension_numbers<[1], [0], [0], [1], [0, 0, 1, 1], [], []>} : vector<128x128xbf16>, vector<128x128xbf16>, vector<128x128xf32> -> vector<128x128xf32>
    %c0_i32 = arith.constant 0 : i32
    %7 = arith.cmpi eq, %arg1, %c0_i32 : i32
    %8 = arith.extui %7 : i1 to i32
    %c0_i32_7 = arith.constant 0 : i32
    %9 = arith.cmpi ne, %8, %c0_i32_7 : i32
    scf.if %9 {
      %c0_10 = arith.constant 0 : index
      %c0_11 = arith.constant 0 : index
      %c0_12 = arith.constant 0 : index
      %13 = vector.load %arg5[%c0_10, %c0_11, %c0_12] : memref<1x128x128xf32, #tpu.memory_space<vmem>>, vector<1x128x128xf32>
      %14 = vector.shape_cast %13 : vector<1x128x128xf32> to vector<128x128xf32>
      %15 = vector.shape_cast %6 : vector<128x128xf32> to vector<1x128x128xf32>
      tpu.vector_store %arg5[%c0_10, %c0_11, %c0_12], %15 {strides = array<i32>} : memref<1x128x128xf32, #tpu.memory_space<vmem>>, vector<1x128x128xf32>,
    } else {
    }
    %c0_i32_8 = arith.constant 0 : i32
    %10 = arith.cmpi sgt, %arg1, %c0_i32_8 : i32
    %11 = arith.extui %10 : i1 to i32
    %c0_i32_9 = arith.constant 0 : i32
    %12 = arith.cmpi ne, %11, %c0_i32_9 : i32
    scf.if %12 {
      %c0_10 = arith.constant 0 : index
      %c0_11 = arith.constant 0 : index
      %c0_12 = arith.constant 0 : index
      %13 = vector.load %arg5[%c0_10, %c0_11, %c0_12] : memref<1x128x128xf32, #tpu.memory_space<vmem>>, vector<1x128x128xf32>
      %14 = vector.shape_cast %13 : vector<1x128x128xf32> to vector<128x128xf32>
      %15 = arith.addf %14, %6 : vector<128x128xf32>
      %c0_13 = arith.constant 0 : index
      %c0_14 = arith.constant 0 : index
      %c0_15 = arith.constant 0 : index
      %16 = vector.load %arg5[%c0_13, %c0_14, %c0_15] : memref<1x128x128xf32, #tpu.memory_space<vmem>>, vector<1x128x128xf32>
      %17 = vector.shape_cast %16 : vector<1x128x128xf32> to vector<128x128xf32>
      %18 = vector.shape_cast %15 : vector<128x128xf32> to vector<1x128x128xf32>
      tpu.vector_store %arg5[%c0_13, %c0_14, %c0_15], %18 {strides = array<i32>} : memref<1x128x128xf32, #tpu.memory_space<vmem>>, vector<1x128x128xf32>,
    } else {
    }
    return
  }
  func.func @transform_0(%arg0: i32, %arg1: i32) -> (i32, i32, i32) {
    %c0_i32 = arith.constant 0 : i32
    %c0_i32_0 = arith.constant 0 : i32
    return %arg0, %arg1, %c0_i32 : i32, i32, i32
  }
  func.func @transform_1(%arg0: i32, %arg1: i32) -> (i32, i32) {
    %c0_i32 = arith.constant 0 : i32
    %c0_i32_0 = arith.constant 0 : i32
    return %c0_i32, %arg1 : i32, i32
  }
  func.func @transform_2(%arg0: i32, %arg1: i32) -> (i32, i32) {
    %c0_i32 = arith.constant 0 : i32
    %c0_i32_0 = arith.constant 0 : i32
    %c0_i32_1 = arith.constant 0 : i32
    return %c0_i32, %c0_i32_0 : i32, i32
  }
  func.func @transform_3(%arg0: i32, %arg1: i32) -> (i32, i32, i32) {
    %c0_i32 = arith.constant 0 : i32
    %c0_i32_0 = arith.constant 0 : i32
    %c0_i32_1 = arith.constant 0 : i32
    return %arg0, %c0_i32, %c0_i32_0 : i32, i32, i32
  }
}

</mosaic_0001>

<bundles_post_ra>
// kernel: make_cutouts_dango.1
= control target key start
LH: loop header
LB: loop body
LE: loop exit
PB: predicated region body
PF: predicated region fallthrough
CT: control target
= control target key end

     0   :  { %s994_s12 = smov 0   ;;  %s996_s13 = smov 0   ;;  %s1107_s0 = inlined_call_operand.vmem [shape: bf16[3,128,128], index: 0, kind: input, shape index: {}]   ;;  %s1108_s1 = inlined_call_operand.vmem [shape: bf16[128,128], index: 1, kind: input, shape index: {}]   ;;  %s1109_s2 = inlined_call_operand.vmem [shape: bf16[128,128], index: 2, kind: input, shape index: {}]   ;;  %s1110_s3 = inlined_call_operand.vmem [shape: f32[3,128,128], index: 3, kind: output, shape index: {}]  }
   0x1   :  { %s998_s14 = smov 0  }
   0x2 LB: > { %s25_s15 = sadd.s32 1, %s968_s13  ;;  %p773_p0 = scmp.ge.s32.totalorder %s972_s14, 1  ;;  %s972_s14 = sphi %s998_s14, %s13_s14   ;;  %s968_s13 = sphi %s996_s13, %s1112_s13   ;;  %s964_s12 = sphi %s994_s12, %s1111_s12  }
   0x3   : > { %p27_p1 = scmp.ge.s32.totalorder %s25_s15, 3  ;;  %p165_p2 = scmp.lt.s32.totalorder %s972_s14, 4 }
   0x5   : > { %s1114_s15 = smov (%p27_p1, %s25_s15), 0  ;;  %p166_p3 = pnand %p773_p0, %p165_p2 }
   0x6   : > { %v926_v0 = vld [vmem:[%s1109_s2] sm:$0xff] (!%p166_p3)   ;;  %p198_p4 = scmp.lt.s32.totalorder (!%p166_p3), %s964_s12, 2  ;;  %v927_v1 = vld [vmem:[%s1109_s2 + $0x8] sm:$0xff] (!%p166_p3)   ;;  %v928_v2 = vld [vmem:[%s1109_s2 + $0x10] sm:$0xff] (!%p166_p3)  }
   0x7   : > { %169 = sbr.rel (%p166_p3) target bundleno = 528 (0x210), region = 32  ;;  %838 = vmatprep.subr.bf16.mxu0 (!%p166_p3), %v926_v0  ;;  %v929_v3 = vld [vmem:[%s1109_s2 + $0x18] sm:$0xff] (!%p166_p3)   ;;  %v930_v5 = vld [vmem:[%s1109_s2 + $0x20] sm:$0xff] (!%p166_p3)   ;;  %v931_v6 = vld [vmem:[%s1109_s2 + $0x28] sm:$0xff] (!%p166_p3)  }
   0x8   : > { %839 = vmatpush3.bf16.msra.mxu0 (!%p166_p3), %v926_v0  ;;  %v932_v7 = vld [vmem:[%s1109_s2 + $0x30] sm:$0xff] (!%p166_p3)   ;;  %v933_v8 = vld [vmem:[%s1109_s2 + $0x38] sm:$0xff] (!%p166_p3)   ;;  %v942_v16 = vld [vmem:[%s1108_s1] sm:$0xff] (!%p166_p3)  }
   0x9   : > { %840 = vmatprep.subr.bf16.mxu0 (!%p166_p3), %v927_v1  ;;  %886 = vmatprep.mubr.bf16.mxu1 (!%p166_p3), %v942_v16  ;;  %v943_v41 = vld [vmem:[%s1108_s1 + $0x8] sm:$0xff] (!%p166_p3)   ;;  %v944_v42 = vld [vmem:[%s1108_s1 + $0x10] sm:$0xff] (!%p166_p3)   ;;  %v945_v43 = vld [vmem:[%s1108_s1 + $0x18] sm:$0xff] (!%p166_p3)  }
   0xa   : > { %v946_v44 = vld [vmem:[%s1108_s1 + $0x20] sm:$0xff] (!%p166_p3)   ;;  %v947_v45 = vld [vmem:[%s1108_s1 + $0x28] sm:$0xff] (!%p166_p3)   ;;  %v948_v46 = vld [vmem:[%s1108_s1 + $0x30] sm:$0xff] (!%p166_p3)  }
   0xb   : > { %v949_v47 = vld [vmem:[%s1108_s1 + $0x38] sm:$0xff] (!%p166_p3)  }
   0xc   : > { %841 = vmatpush3.bf16.msra.mxu0 (!%p166_p3), %v927_v1 }
   0xd   : > { %842 = vmatprep.subr.bf16.mxu0 (!%p166_p3), %v928_v2 }
   0xe   : > { %s1116_s12 = smov (!%p198_p4, %s964_s12), 2 }
   0xf   : > { %s804_s22 = sshll.u32 %s1116_s12, 6  ;;  %s805_s29 = sshll.u32 %s1116_s12, 7 }
  0x10   : > { %s1027_s25 = scalar_lea.vmem %s1107_s0, %s804_s22  ;;  %843 = vmatpush3.bf16.msra.mxu0 %v928_v2  ;;  %s1080_s5 = scalar_lea.vmem %s1110_s3, %s805_s29 }
  0x11   : > { %v934_v4 = vld [vmem:[%s1027_s25] sm:$0xff]   ;;  %844 = vmatprep.subr.bf16.mxu0 %v929_v3  ;;  %v935_v9 = vld [vmem:[%s1027_s25 + $0x8] sm:$0xff]   ;;  %v936_v10 = vld [vmem:[%s1027_s25 + $0x10] sm:$0xff]  }
  0x12   : > { %854 = vmatprep.mubr.bf16.mxu0 %v934_v4  ;;  %v937_v11 = vld [vmem:[%s1027_s25 + $0x18] sm:$0xff]   ;;  %v938_v12 = vld [vmem:[%s1027_s25 + $0x20] sm:$0xff]   ;;  %v939_v13 = vld [vmem:[%s1027_s25 + $0x28] sm:$0xff]  }
  0x13   : > { %v940_v14 = vld [vmem:[%s1027_s25 + $0x30] sm:$0xff]   ;;  %v941_v15 = vld [vmem:[%s1027_s25 + $0x38] sm:$0xff]  }
  0x14   : > { %845 = vmatpush3.bf16.msra.mxu0 %v929_v3 }
  0x15   : > { %846 = vmatprep.subr.bf16.mxu0 %v930_v5 }
  0x18   : > { %847 = vmatpush3.bf16.msra.mxu0 %v930_v5 }
  0x19   : > { %848 = vmatprep.subr.bf16.mxu0 %v931_v6 }
  0x1c   : > { %849 = vmatpush3.bf16.msra.mxu0 %v931_v6 }
  0x1d   : > { %850 = vmatprep.subr.bf16.mxu0 %v932_v7 }
  0x20   : > { %851 = vmatpush3.bf16.msra.mxu0 %v932_v7 }
  0x21   : > { %852 = vmatprep.subr.bf16.mxu0 %v933_v8 }
  0x24   : > { %853 = vmatpush3.bf16.msra.mxu0 %v933_v8 }
  0x27   : > { %855 = vmatmul.mubr.bf16.vlgmr.msra.gmra.mrb[0].mxu0 %v935_v9 }
  0x28   : > { %858 = vmatprep.mubr.bf16.mxu0 %v936_v10 }
  0x2f   : > { %859 = vmatmul.mubr.bf16.gmra.mrb[4].mxu0 %v937_v11 }
  0x30   : > { %862 = vmatprep.mubr.bf16.mxu0 %v938_v12 }
  0x37   : > { %863 = vmatmul.mubr.bf16.gmra.mrb[8].mxu0 %v939_v13 }
  0x38   : > { %866 = vmatprep.mubr.bf16.mxu0 %v940_v14 }
  0x3f   : > { %867 = vmatmul.mubr.bf16.gmra.mrb[12].mxu0 %v941_v15 }
  0xfa   : > { %v856_v17 = vpop.f32.mrb[0].mxu0 }
  0xfb   : > { %v379_v18 = vpop.f32.mrb[1].mxu0 }
  0xfc   : > { %v857_v19 = vpop.f32.mrb[2].mxu0 }
  0xfd   : > { %v443_v20 = vpack.c.bf16 %v857_v19, %v856_v17  ;;  %v382_v21 = vpop.f32.mrb[3].mxu0 }
  0xfe   : > { %v442_v22 = vpack.c.bf16 %v382_v21, %v379_v18 }
 0x100   : > { %870 = vmatprep.subr.bf16.mxu1 %v442_v22 }
 0x101   : > { %871 = vmatpush3.bf16.msra.mxu1 %v442_v22 }
 0x102   : > { %v860_v23 = vpop.f32.mrb[4].mxu0  ;;  %872 = vmatprep.subr.bf16.mxu1 %v443_v20 }
 0x103   : > { %v395_v24 = vpop.f32.mrb[5].mxu0 }
 0x104   : > { %v861_v25 = vpop.f32.mrb[6].mxu0 }
 0x105   : > { %v445_v26 = vpack.c.bf16 %v861_v25, %v860_v23  ;;  %v398_v27 = vpop.f32.mrb[7].mxu0  ;;  %873 = vmatpush3.bf16.msra.mxu1 %v443_v20 }
 0x106   : > { %v444_v28 = vpack.c.bf16 %v398_v27, %v395_v24 }
 0x108   : > { %874 = vmatprep.subr.bf16.mxu1 %v444_v28 }
 0x109   : > { %875 = vmatpush3.bf16.msra.mxu1 %v444_v28 }
 0x10a   : > { %v864_v29 = vpop.f32.mrb[8].mxu0  ;;  %876 = vmatprep.subr.bf16.mxu1 %v445_v26 }
 0x10b   : > { %v411_v30 = vpop.f32.mrb[9].mxu0 }
 0x10c   : > { %v865_v31 = vpop.f32.mrb[10].mxu0 }
 0x10d   : > { %v447_v32 = vpack.c.bf16 %v865_v31, %v864_v29  ;;  %v414_v33 = vpop.f32.mrb[11].mxu0  ;;  %877 = vmatpush3.bf16.msra.mxu1 %v445_v26 }
 0x10e   : > { %v446_v34 = vpack.c.bf16 %v414_v33, %v411_v30 }
 0x110   : > { %878 = vmatprep.subr.bf16.mxu1 %v446_v34 }
 0x111   : > { %879 = vmatpush3.bf16.msra.mxu1 %v446_v34 }
 0x112   : > { %v868_v35 = vpop.f32.mrb[12].mxu0  ;;  %880 = vmatprep.subr.bf16.mxu1 %v447_v32 }
 0x113   : > { %v427_v36 = vpop.f32.mrb[13].mxu0 }
 0x114   : > { %v869_v37 = vpop.f32.mrb[14].mxu0 }
 0x115   : > { %v449_v38 = vpack.c.bf16 %v869_v37, %v868_v35  ;;  %v430_v39 = vpop.f32.mrb[15].mxu0  ;;  %881 = vmatpush3.bf16.msra.mxu1 %v447_v32 }
 0x116   : > { %v448_v40 = vpack.c.bf16 %v430_v39, %v427_v36 }
 0x118   : > { %882 = vmatprep.subr.bf16.mxu1 %v448_v40 }
 0x119   : > { %883 = vmatpush3.bf16.msra.mxu1 %v448_v40 }
 0x11a   : > { %884 = vmatprep.subr.bf16.mxu1 %v449_v38 }
 0x11d   : > { %885 = vmatpush3.bf16.msra.mxu1 %v449_v38 }
 0x120   : > { %887 = vmatmul.mubr.bf16.vlgmr.msra.gmra.mrb[0].mxu1 %v943_v41 }
 0x121   : > { %890 = vmatprep.mubr.bf16.mxu1 %v944_v42 }
 0x128   : > { %891 = vmatmul.mubr.bf16.gmra.mrb[4].mxu1 %v945_v43 }
 0x129   : > { %894 = vmatprep.mubr.bf16.mxu1 %v946_v44 }
 0x130   : > { %895 = vmatmul.mubr.bf16.gmra.mrb[8].mxu1 %v947_v45 }
 0x131   : > { %898 = vmatprep.mubr.bf16.mxu1 %v948_v46 }
 0x138   : > { %899 = vmatmul.mubr.bf16.gmra.mrb[12].mxu1 %v949_v47 }
 0x1f3   : > { %v888_v48 = vpop.f32.mrb[0].mxu1 }
 0x1f4   : > { %617 = vst [vmem:[%s1080_s5 + $0x10] sm:$0xff] %v888_v48  ;;  %v548_v49 = vpop.f32.mrb[1].mxu1 }
 0x1f5   : > { %615 = vst [vmem:[%s1080_s5] sm:$0xff] %v548_v49  ;;  %v889_v50 = vpop.f32.mrb[2].mxu1 }
 0x1f6   : > { %618 = vst [vmem:[%s1080_s5 + $0x18] sm:$0xff] %v889_v50  ;;  %v551_v51 = vpop.f32.mrb[3].mxu1 }
 0x1f7   : > { %616 = vst [vmem:[%s1080_s5 + $0x8] sm:$0xff] %v551_v51 }
 0x1fb   : > { %v892_v52 = vpop.f32.mrb[4].mxu1 }
 0x1fc   : > { %621 = vst [vmem:[%s1080_s5 + $0x30] sm:$0xff] %v892_v52  ;;  %v564_v53 = vpop.f32.mrb[5].mxu1 }
 0x1fd   : > { %619 = vst [vmem:[%s1080_s5 + $0x20] sm:$0xff] %v564_v53  ;;  %v893_v54 = vpop.f32.mrb[6].mxu1 }
 0x1fe   : > { %622 = vst [vmem:[%s1080_s5 + $0x38] sm:$0xff] %v893_v54  ;;  %v567_v55 = vpop.f32.mrb[7].mxu1 }
 0x1ff   : > { %620 = vst [vmem:[%s1080_s5 + $0x28] sm:$0xff] %v567_v55 }
 0x203   : > { %v896_v56 = vpop.f32.mrb[8].mxu1 }
 0x204   : > { %625 = vst [vmem:[%s1080_s5 + $0x50] sm:$0xff] %v896_v56  ;;  %v580_v57 = vpop.f32.mrb[9].mxu1 }
 0x205   : > { %623 = vst [vmem:[%s1080_s5 + $0x40] sm:$0xff] %v580_v57  ;;  %v897_v58 = vpop.f32.mrb[10].mxu1 }
 0x206   : > { %626 = vst [vmem:[%s1080_s5 + $0x58] sm:$0xff] %v897_v58  ;;  %v583_v59 = vpop.f32.mrb[11].mxu1 }
 0x207   : > { %624 = vst [vmem:[%s1080_s5 + $0x48] sm:$0xff] %v583_v59 }
 0x20b   : > { %v900_v60 = vpop.f32.mrb[12].mxu1 }
 0x20c   : > { %629 = vst [vmem:[%s1080_s5 + $0x70] sm:$0xff] %v900_v60  ;;  %v596_v61 = vpop.f32.mrb[13].mxu1 }
 0x20d   : > { %627 = vst [vmem:[%s1080_s5 + $0x60] sm:$0xff] %v596_v61  ;;  %v901_v62 = vpop.f32.mrb[14].mxu1 }
 0x20e   : > { %630 = vst [vmem:[%s1080_s5 + $0x78] sm:$0xff] %v901_v62  ;;  %v599_v63 = vpop.f32.mrb[15].mxu1 }
 0x20f   : > { %628 = vst [vmem:[%s1080_s5 + $0x68] sm:$0xff] %v599_v63 }
 0x210 PF: > { %s13_s14 = sadd.s32 1, %s972_s14   ;;  %s1111_s12 = smov %s968_s13 }
 0x211   : > { %p10_p5 = scmp.ge.s32.totalorder %s13_s14, 5   ;;  %s1112_s13 = smov %s1114_s15 }
 0x213   :  { %12 = sbr.rel (!%p10_p5) target bundleno = 2 (0x2), region = 73 }

</bundles_post_ra>
